<compile_context>
chip_gen: v6e
topology: v6e:2x2x1
jax: 0.10.0
libtpu: 0.0.40
codegen_flags: <defaults>
</compile_context>

<pallas_src>
from functools import partial

import jax
import jax.numpy as jnp
from jax import lax
from jax.experimental import pallas as pl
from jax.experimental.pallas import tpu as pltpu


def _lambda_shortcut_kernel(x_ref, o_ref, *, c_in, pad_lo, pad_hi, nb, ho, wo):
    # x_ref: (Nb, C, H, W)   o_ref: (Nb, C_out, Ho*Wo)
    how = ho * wo

    # Zero only the pad channels (data channels are written exactly once below).
    if pad_lo > 0:
        o_ref[:, :pad_lo, :] = jnp.zeros((nb, pad_lo, how), o_ref.dtype)
    if pad_hi > 0:
        o_ref[:, pad_lo + c_in:, :] = jnp.zeros((nb, pad_hi, how), o_ref.dtype)

    def process_image(n):
        # Build the flat (C, Ho*Wo) subsampled image: flat[c, i*Wo + j] = x[c, 2i, 2j].
        pieces = []
        for i in range(ho):                       # static loop over output rows
            r = x_ref[n, :, 2 * i, :]             # (C, W): only even rows ever read
            # even columns -> (C, Wo) via lane concatenation of 1-lane static slices
            pieces.append(
                jnp.concatenate([r[:, 2 * j:2 * j + 1] for j in range(wo)], axis=-1)
            )
        flat = jnp.concatenate(pieces, axis=-1)   # (C, Ho*Wo)  lane-dense
        o_ref[n, pad_lo:pad_lo + c_in, :] = flat  # single wide store per image

    def loop_body(n, carry):
        process_image(n)
        return carry

    lax.fori_loop(0, nb, loop_body, 0)


def _pick_batch_block(n, max_nb=8):
    """Largest Nb <= max_nb dividing N that keeps >= 2 grid steps (prefer an even
    grid so v7x's two TensorCores both get work)."""
    if n <= 1:
        return max(n, 1)
    candidates = [nb for nb in range(1, min(n, max_nb) + 1)
                  if n % nb == 0 and (n // nb) >= 2]
    if not candidates:
        return n  # grid of 1 step (e.g. prime N <= max_nb)
    even = [nb for nb in candidates if (n // nb) % 2 == 0]
    return max(even) if even else max(candidates)


def lambda_layer(x, planes):
    """Pallas implementation of LambdaLayer with the VT.py option-A shortcut lambda."""
    N, C, H, W = x.shape
    Ho, Wo = (H + 1) // 2, (W + 1) // 2          # matches PyTorch x[:, :, ::2, ::2]
    pad = planes // 4
    C_out = C + 2 * pad

    Nb = _pick_batch_block(N)
    grid = (N // Nb,)

    kernel = partial(_lambda_shortcut_kernel,
                     c_in=C, pad_lo=pad, pad_hi=pad, nb=Nb, ho=Ho, wo=Wo)

    out_flat = pl.pallas_call(
        kernel,
        out_shape=jax.ShapeDtypeStruct((N, C_out, Ho * Wo), x.dtype),
        grid_spec=pltpu.PrefetchScalarGridSpec(
            num_scalar_prefetch=0,
            grid=grid,
            in_specs=[pl.BlockSpec((Nb, C, H, W), lambda b: (b, 0, 0, 0))],
            out_specs=pl.BlockSpec((Nb, C_out, Ho * Wo), lambda b: (b, 0, 0)),
        ),
        compiler_params=pltpu.CompilerParams(dimension_semantics=("parallel",)),
    )(x)

    # Free, layout-preserving reshape back to NCHW.
    return out_flat.reshape(N, C_out, Ho, Wo)


if __name__ == "__main__":
    key = jax.random.PRNGKey(0)
    N, C, H, W = 2, 4, 16, 16
    planes = 8  # -> pad planes//4 = 2 channels each side, C_out = 8

    x = jax.random.normal(key, (N, C, H, W), dtype=jnp.float32)

    y = lambda_layer(x, planes)
    jax.block_until_ready(y)

    # Pure-JAX reference of the PyTorch lambda:
    # F.pad(x[:, :, ::2, ::2], (0,0, 0,0, planes//4, planes//4), "constant", 0)
    ref = jnp.pad(
        x[:, :, ::2, ::2],
        ((0, 0), (planes // 4, planes // 4), (0, 0), (0, 0)),
        mode="constant",
    )

    assert y.shape == ref.shape, (y.shape, ref.shape)
    assert jnp.allclose(y, ref, atol=1e-6, rtol=1e-6), float(jnp.abs(y - ref).max())

    print("KERNEL_OK")
</pallas_src>

<mosaic_0001>
module attributes {stable_mosaic.version = 11 : i64} {
  func.func @_lambda_shortcut_kernel(%arg0: i32, %arg1: memref<1x4x16x16xf32, #tpu.memory_space<vmem>>, %arg2: memref<1x8x64xf32, #tpu.memory_space<vmem>>) attributes {dimension_semantics = [#tpu.dimension_semantics<parallel>], iteration_bounds = array<i64: 2>, scalar_prefetch = 0 : i64, scratch_operands = 0 : i64, tpu.core_type = #tpu.core_type<tc>, window_params = [{transform_indices = @transform_0, window_bounds = array<i64: 1, 4, 16, 16>}, {transform_indices = @transform_1, window_bounds = array<i64: 1, 8, 64>}]} {
    %cst = arith.constant 0.000000e+00 : f32
    %0 = vector.broadcast %cst : f32 to vector<1x2x64xf32>
    %c0 = arith.constant 0 : index
    %c0_0 = arith.constant 0 : index
    %c0_1 = arith.constant 0 : index
    %1 = vector.load %arg2[%c0, %c0_0, %c0_1] : memref<1x8x64xf32, #tpu.memory_space<vmem>>, vector<1x2x64xf32>
    tpu.vector_store %arg2[%c0, %c0_0, %c0_1], %0 {strides = array<i32>} : memref<1x8x64xf32, #tpu.memory_space<vmem>>, vector<1x2x64xf32>,
    %cst_2 = arith.constant 0.000000e+00 : f32
    %2 = vector.broadcast %cst_2 : f32 to vector<1x2x64xf32>
    %c0_3 = arith.constant 0 : index
    %c6 = arith.constant 6 : index
    %c0_4 = arith.constant 0 : index
    %3 = vector.load %arg2[%c0_3, %c6, %c0_4] : memref<1x8x64xf32, #tpu.memory_space<vmem>>, vector<1x2x64xf32>
    tpu.vector_store %arg2[%c0_3, %c6, %c0_4], %2 {strides = array<i32>} : memref<1x8x64xf32, #tpu.memory_space<vmem>>, vector<1x2x64xf32>,
    %c0_i32 = arith.constant 0 : i32
    %4 = arith.index_cast %c0_i32 : i32 to index
    %c0_5 = arith.constant 0 : index
    %c0_6 = arith.constant 0 : index
    %c0_7 = arith.constant 0 : index
    %5 = vector.load %arg1[%4, %c0_5, %c0_6, %c0_7] : memref<1x4x16x16xf32, #tpu.memory_space<vmem>>, vector<1x4x1x16xf32>
    %6 = vector.shape_cast %5 : vector<1x4x1x16xf32> to vector<4x16xf32>
    %7 = vector.extract_strided_slice %6 {offsets = [0, 0], sizes = [4, 1], strides = [1, 1]} : vector<4x16xf32> to vector<4x1xf32>
    %8 = vector.extract_strided_slice %6 {offsets = [0, 2], sizes = [4, 1], strides = [1, 1]} : vector<4x16xf32> to vector<4x1xf32>
    %9 = vector.extract_strided_slice %6 {offsets = [0, 4], sizes = [4, 1], strides = [1, 1]} : vector<4x16xf32> to vector<4x1xf32>
    %10 = vector.extract_strided_slice %6 {offsets = [0, 6], sizes = [4, 1], strides = [1, 1]} : vector<4x16xf32> to vector<4x1xf32>
    %11 = vector.extract_strided_slice %6 {offsets = [0, 8], sizes = [4, 1], strides = [1, 1]} : vector<4x16xf32> to vector<4x1xf32>
    %12 = vector.extract_strided_slice %6 {offsets = [0, 10], sizes = [4, 1], strides = [1, 1]} : vector<4x16xf32> to vector<4x1xf32>
    %13 = vector.extract_strided_slice %6 {offsets = [0, 12], sizes = [4, 1], strides = [1, 1]} : vector<4x16xf32> to vector<4x1xf32>
    %14 = vector.extract_strided_slice %6 {offsets = [0, 14], sizes = [4, 1], strides = [1, 1]} : vector<4x16xf32> to vector<4x1xf32>
    %15 = tpu.concatenate %7, %8, %9, %10, %11, %12, %13, %14 in 1 : vector<4x1xf32>, vector<4x1xf32>, vector<4x1xf32>, vector<4x1xf32>, vector<4x1xf32>, vector<4x1xf32>, vector<4x1xf32>, vector<4x1xf32> -> vector<4x8xf32>
    %16 = arith.index_cast %c0_i32 : i32 to index
    %c0_8 = arith.constant 0 : index
    %c2 = arith.constant 2 : index
    %c0_9 = arith.constant 0 : index
    %17 = vector.load %arg1[%16, %c0_8, %c2, %c0_9] : memref<1x4x16x16xf32, #tpu.memory_space<vmem>>, vector<1x4x1x16xf32>
    %18 = vector.shape_cast %17 : vector<1x4x1x16xf32> to vector<4x16xf32>
    %19 = vector.extract_strided_slice %18 {offsets = [0, 0], sizes = [4, 1], strides = [1, 1]} : vector<4x16xf32> to vector<4x1xf32>
    %20 = vector.extract_strided_slice %18 {offsets = [0, 2], sizes = [4, 1], strides = [1, 1]} : vector<4x16xf32> to vector<4x1xf32>
    %21 = vector.extract_strided_slice %18 {offsets = [0, 4], sizes = [4, 1], strides = [1, 1]} : vector<4x16xf32> to vector<4x1xf32>
    %22 = vector.extract_strided_slice %18 {offsets = [0, 6], sizes = [4, 1], strides = [1, 1]} : vector<4x16xf32> to vector<4x1xf32>
    %23 = vector.extract_strided_slice %18 {offsets = [0, 8], sizes = [4, 1], strides = [1, 1]} : vector<4x16xf32> to vector<4x1xf32>
    %24 = vector.extract_strided_slice %18 {offsets = [0, 10], sizes = [4, 1], strides = [1, 1]} : vector<4x16xf32> to vector<4x1xf32>
    %25 = vector.extract_strided_slice %18 {offsets = [0, 12], sizes = [4, 1], strides = [1, 1]} : vector<4x16xf32> to vector<4x1xf32>
    %26 = vector.extract_strided_slice %18 {offsets = [0, 14], sizes = [4, 1], strides = [1, 1]} : vector<4x16xf32> to vector<4x1xf32>
    %27 = tpu.concatenate %19, %20, %21, %22, %23, %24, %25, %26 in 1 : vector<4x1xf32>, vector<4x1xf32>, vector<4x1xf32>, vector<4x1xf32>, vector<4x1xf32>, vector<4x1xf32>, vector<4x1xf32>, vector<4x1xf32> -> vector<4x8xf32>
    %28 = arith.index_cast %c0_i32 : i32 to index
    %c0_10 = arith.constant 0 : index
    %c4 = arith.constant 4 : index
    %c0_11 = arith.constant 0 : index
    %29 = vector.load %arg1[%28, %c0_10, %c4, %c0_11] : memref<1x4x16x16xf32, #tpu.memory_space<vmem>>, vector<1x4x1x16xf32>
    %30 = vector.shape_cast %29 : vector<1x4x1x16xf32> to vector<4x16xf32>
    %31 = vector.extract_strided_slice %30 {offsets = [0, 0], sizes = [4, 1], strides = [1, 1]} : vector<4x16xf32> to vector<4x1xf32>
    %32 = vector.extract_strided_slice %30 {offsets = [0, 2], sizes = [4, 1], strides = [1, 1]} : vector<4x16xf32> to vector<4x1xf32>
    %33 = vector.extract_strided_slice %30 {offsets = [0, 4], sizes = [4, 1], strides = [1, 1]} : vector<4x16xf32> to vector<4x1xf32>
    %34 = vector.extract_strided_slice %30 {offsets = [0, 6], sizes = [4, 1], strides = [1, 1]} : vector<4x16xf32> to vector<4x1xf32>
    %35 = vector.extract_strided_slice %30 {offsets = [0, 8], sizes = [4, 1], strides = [1, 1]} : vector<4x16xf32> to vector<4x1xf32>
    %36 = vector.extract_strided_slice %30 {offsets = [0, 10], sizes = [4, 1], strides = [1, 1]} : vector<4x16xf32> to vector<4x1xf32>
    %37 = vector.extract_strided_slice %30 {offsets = [0, 12], sizes = [4, 1], strides = [1, 1]} : vector<4x16xf32> to vector<4x1xf32>
    %38 = vector.extract_strided_slice %30 {offsets = [0, 14], sizes = [4, 1], strides = [1, 1]} : vector<4x16xf32> to vector<4x1xf32>
    %39 = tpu.concatenate %31, %32, %33, %34, %35, %36, %37, %38 in 1 : vector<4x1xf32>, vector<4x1xf32>, vector<4x1xf32>, vector<4x1xf32>, vector<4x1xf32>, vector<4x1xf32>, vector<4x1xf32>, vector<4x1xf32> -> vector<4x8xf32>
    %40 = arith.index_cast %c0_i32 : i32 to index
    %c0_12 = arith.constant 0 : index
    %c6_13 = arith.constant 6 : index
    %c0_14 = arith.constant 0 : index
    %41 = vector.load %arg1[%40, %c0_12, %c6_13, %c0_14] : memref<1x4x16x16xf32, #tpu.memory_space<vmem>>, vector<1x4x1x16xf32>
    %42 = vector.shape_cast %41 : vector<1x4x1x16xf32> to vector<4x16xf32>
    %43 = vector.extract_strided_slice %42 {offsets = [0, 0], sizes = [4, 1], strides = [1, 1]} : vector<4x16xf32> to vector<4x1xf32>
    %44 = vector.extract_strided_slice %42 {offsets = [0, 2], sizes = [4, 1], strides = [1, 1]} : vector<4x16xf32> to vector<4x1xf32>
    %45 = vector.extract_strided_slice %42 {offsets = [0, 4], sizes = [4, 1], strides = [1, 1]} : vector<4x16xf32> to vector<4x1xf32>
    %46 = vector.extract_strided_slice %42 {offsets = [0, 6], sizes = [4, 1], strides = [1, 1]} : vector<4x16xf32> to vector<4x1xf32>
    %47 = vector.extract_strided_slice %42 {offsets = [0, 8], sizes = [4, 1], strides = [1, 1]} : vector<4x16xf32> to vector<4x1xf32>
    %48 = vector.extract_strided_slice %42 {offsets = [0, 10], sizes = [4, 1], strides = [1, 1]} : vector<4x16xf32> to vector<4x1xf32>
    %49 = vector.extract_strided_slice %42 {offsets = [0, 12], sizes = [4, 1], strides = [1, 1]} : vector<4x16xf32> to vector<4x1xf32>
    %50 = vector.extract_strided_slice %42 {offsets = [0, 14], sizes = [4, 1], strides = [1, 1]} : vector<4x16xf32> to vector<4x1xf32>
    %51 = tpu.concatenate %43, %44, %45, %46, %47, %48, %49, %50 in 1 : vector<4x1xf32>, vector<4x1xf32>, vector<4x1xf32>, vector<4x1xf32>, vector<4x1xf32>, vector<4x1xf32>, vector<4x1xf32>, vector<4x1xf32> -> vector<4x8xf32>
    %52 = arith.index_cast %c0_i32 : i32 to index
    %c0_15 = arith.constant 0 : index
    %c8 = arith.constant 8 : index
    %c0_16 = arith.constant 0 : index
    %53 = vector.load %arg1[%52, %c0_15, %c8, %c0_16] : memref<1x4x16x16xf32, #tpu.memory_space<vmem>>, vector<1x4x1x16xf32>
    %54 = vector.shape_cast %53 : vector<1x4x1x16xf32> to vector<4x16xf32>
    %55 = vector.extract_strided_slice %54 {offsets = [0, 0], sizes = [4, 1], strides = [1, 1]} : vector<4x16xf32> to vector<4x1xf32>
    %56 = vector.extract_strided_slice %54 {offsets = [0, 2], sizes = [4, 1], strides = [1, 1]} : vector<4x16xf32> to vector<4x1xf32>
    %57 = vector.extract_strided_slice %54 {offsets = [0, 4], sizes = [4, 1], strides = [1, 1]} : vector<4x16xf32> to vector<4x1xf32>
    %58 = vector.extract_strided_slice %54 {offsets = [0, 6], sizes = [4, 1], strides = [1, 1]} : vector<4x16xf32> to vector<4x1xf32>
    %59 = vector.extract_strided_slice %54 {offsets = [0, 8], sizes = [4, 1], strides = [1, 1]} : vector<4x16xf32> to vector<4x1xf32>
    %60 = vector.extract_strided_slice %54 {offsets = [0, 10], sizes = [4, 1], strides = [1, 1]} : vector<4x16xf32> to vector<4x1xf32>
    %61 = vector.extract_strided_slice %54 {offsets = [0, 12], sizes = [4, 1], strides = [1, 1]} : vector<4x16xf32> to vector<4x1xf32>
    %62 = vector.extract_strided_slice %54 {offsets = [0, 14], sizes = [4, 1], strides = [1, 1]} : vector<4x16xf32> to vector<4x1xf32>
    %63 = tpu.concatenate %55, %56, %57, %58, %59, %60, %61, %62 in 1 : vector<4x1xf32>, vector<4x1xf32>, vector<4x1xf32>, vector<4x1xf32>, vector<4x1xf32>, vector<4x1xf32>, vector<4x1xf32>, vector<4x1xf32> -> vector<4x8xf32>
    %64 = arith.index_cast %c0_i32 : i32 to index
    %c0_17 = arith.constant 0 : index
    %c10 = arith.constant 10 : index
    %c0_18 = arith.constant 0 : index
    %65 = vector.load %arg1[%64, %c0_17, %c10, %c0_18] : memref<1x4x16x16xf32, #tpu.memory_space<vmem>>, vector<1x4x1x16xf32>
    %66 = vector.shape_cast %65 : vector<1x4x1x16xf32> to vector<4x16xf32>
    %67 = vector.extract_strided_slice %66 {offsets = [0, 0], sizes = [4, 1], strides = [1, 1]} : vector<4x16xf32> to vector<4x1xf32>
    %68 = vector.extract_strided_slice %66 {offsets = [0, 2], sizes = [4, 1], strides = [1, 1]} : vector<4x16xf32> to vector<4x1xf32>
    %69 = vector.extract_strided_slice %66 {offsets = [0, 4], sizes = [4, 1], strides = [1, 1]} : vector<4x16xf32> to vector<4x1xf32>
    %70 = vector.extract_strided_slice %66 {offsets = [0, 6], sizes = [4, 1], strides = [1, 1]} : vector<4x16xf32> to vector<4x1xf32>
    %71 = vector.extract_strided_slice %66 {offsets = [0, 8], sizes = [4, 1], strides = [1, 1]} : vector<4x16xf32> to vector<4x1xf32>
    %72 = vector.extract_strided_slice %66 {offsets = [0, 10], sizes = [4, 1], strides = [1, 1]} : vector<4x16xf32> to vector<4x1xf32>
    %73 = vector.extract_strided_slice %66 {offsets = [0, 12], sizes = [4, 1], strides = [1, 1]} : vector<4x16xf32> to vector<4x1xf32>
    %74 = vector.extract_strided_slice %66 {offsets = [0, 14], sizes = [4, 1], strides = [1, 1]} : vector<4x16xf32> to vector<4x1xf32>
    %75 = tpu.concatenate %67, %68, %69, %70, %71, %72, %73, %74 in 1 : vector<4x1xf32>, vector<4x1xf32>, vector<4x1xf32>, vector<4x1xf32>, vector<4x1xf32>, vector<4x1xf32>, vector<4x1xf32>, vector<4x1xf32> -> vector<4x8xf32>
    %76 = arith.index_cast %c0_i32 : i32 to index
    %c0_19 = arith.constant 0 : index
    %c12 = arith.constant 12 : index
    %c0_20 = arith.constant 0 : index
    %77 = vector.load %arg1[%76, %c0_19, %c12, %c0_20] : memref<1x4x16x16xf32, #tpu.memory_space<vmem>>, vector<1x4x1x16xf32>
    %78 = vector.shape_cast %77 : vector<1x4x1x16xf32> to vector<4x16xf32>
    %79 = vector.extract_strided_slice %78 {offsets = [0, 0], sizes = [4, 1], strides = [1, 1]} : vector<4x16xf32> to vector<4x1xf32>
    %80 = vector.extract_strided_slice %78 {offsets = [0, 2], sizes = [4, 1], strides = [1, 1]} : vector<4x16xf32> to vector<4x1xf32>
    %81 = vector.extract_strided_slice %78 {offsets = [0, 4], sizes = [4, 1], strides = [1, 1]} : vector<4x16xf32> to vector<4x1xf32>
    %82 = vector.extract_strided_slice %78 {offsets = [0, 6], sizes = [4, 1], strides = [1, 1]} : vector<4x16xf32> to vector<4x1xf32>
    %83 = vector.extract_strided_slice %78 {offsets = [0, 8], sizes = [4, 1], strides = [1, 1]} : vector<4x16xf32> to vector<4x1xf32>
    %84 = vector.extract_strided_slice %78 {offsets = [0, 10], sizes = [4, 1], strides = [1, 1]} : vector<4x16xf32> to vector<4x1xf32>
    %85 = vector.extract_strided_slice %78 {offsets = [0, 12], sizes = [4, 1], strides = [1, 1]} : vector<4x16xf32> to vector<4x1xf32>
    %86 = vector.extract_strided_slice %78 {offsets = [0, 14], sizes = [4, 1], strides = [1, 1]} : vector<4x16xf32> to vector<4x1xf32>
    %87 = tpu.concatenate %79, %80, %81, %82, %83, %84, %85, %86 in 1 : vector<4x1xf32>, vector<4x1xf32>, vector<4x1xf32>, vector<4x1xf32>, vector<4x1xf32>, vector<4x1xf32>, vector<4x1xf32>, vector<4x1xf32> -> vector<4x8xf32>
    %88 = arith.index_cast %c0_i32 : i32 to index
    %c0_21 = arith.constant 0 : index
    %c14 = arith.constant 14 : index
    %c0_22 = arith.constant 0 : index
    %89 = vector.load %arg1[%88, %c0_21, %c14, %c0_22] : memref<1x4x16x16xf32, #tpu.memory_space<vmem>>, vector<1x4x1x16xf32>
    %90 = vector.shape_cast %89 : vector<1x4x1x16xf32> to vector<4x16xf32>
    %91 = vector.extract_strided_slice %90 {offsets = [0, 0], sizes = [4, 1], strides = [1, 1]} : vector<4x16xf32> to vector<4x1xf32>
    %92 = vector.extract_strided_slice %90 {offsets = [0, 2], sizes = [4, 1], strides = [1, 1]} : vector<4x16xf32> to vector<4x1xf32>
    %93 = vector.extract_strided_slice %90 {offsets = [0, 4], sizes = [4, 1], strides = [1, 1]} : vector<4x16xf32> to vector<4x1xf32>
    %94 = vector.extract_strided_slice %90 {offsets = [0, 6], sizes = [4, 1], strides = [1, 1]} : vector<4x16xf32> to vector<4x1xf32>
    %95 = vector.extract_strided_slice %90 {offsets = [0, 8], sizes = [4, 1], strides = [1, 1]} : vector<4x16xf32> to vector<4x1xf32>
    %96 = vector.extract_strided_slice %90 {offsets = [0, 10], sizes = [4, 1], strides = [1, 1]} : vector<4x16xf32> to vector<4x1xf32>
    %97 = vector.extract_strided_slice %90 {offsets = [0, 12], sizes = [4, 1], strides = [1, 1]} : vector<4x16xf32> to vector<4x1xf32>
    %98 = vector.extract_strided_slice %90 {offsets = [0, 14], sizes = [4, 1], strides = [1, 1]} : vector<4x16xf32> to vector<4x1xf32>
    %99 = tpu.concatenate %91, %92, %93, %94, %95, %96, %97, %98 in 1 : vector<4x1xf32>, vector<4x1xf32>, vector<4x1xf32>, vector<4x1xf32>, vector<4x1xf32>, vector<4x1xf32>, vector<4x1xf32>, vector<4x1xf32> -> vector<4x8xf32>
    %100 = tpu.concatenate %15, %27, %39, %51, %63, %75, %87, %99 in 1 : vector<4x8xf32>, vector<4x8xf32>, vector<4x8xf32>, vector<4x8xf32>, vector<4x8xf32>, vector<4x8xf32>, vector<4x8xf32>, vector<4x8xf32> -> vector<4x64xf32>
    %101 = arith.index_cast %c0_i32 : i32 to index
    %c2_23 = arith.constant 2 : index
    %c0_24 = arith.constant 0 : index
    %102 = vector.load %arg2[%101, %c2_23, %c0_24] : memref<1x8x64xf32, #tpu.memory_space<vmem>>, vector<1x4x64xf32>
    %103 = vector.shape_cast %102 : vector<1x4x64xf32> to vector<4x64xf32>
    %104 = vector.shape_cast %100 : vector<4x64xf32> to vector<1x4x64xf32>
    tpu.vector_store %arg2[%101, %c2_23, %c0_24], %104 {strides = array<i32>} : memref<1x8x64xf32, #tpu.memory_space<vmem>>, vector<1x4x64xf32>,
    %c1_i32 = arith.constant 1 : i32
    return
  }
  func.func @transform_0(%arg0: i32) -> (i32, i32, i32, i32) {
    %c0_i32 = arith.constant 0 : i32
    %c0_i32_0 = arith.constant 0 : i32
    %c0_i32_1 = arith.constant 0 : i32
    %c0_i32_2 = arith.constant 0 : i32
    return %arg0, %c0_i32, %c0_i32_0, %c0_i32_1 : i32, i32, i32, i32
  }
  func.func @transform_1(%arg0: i32) -> (i32, i32, i32) {
    %c0_i32 = arith.constant 0 : i32
    %c0_i32_0 = arith.constant 0 : i32
    %c0_i32_1 = arith.constant 0 : i32
    return %arg0, %c0_i32, %c0_i32_0 : i32, i32, i32
  }
}

</mosaic_0001>

<bundles_post_ra>
// kernel: tpu_custom_call.1
= control target key start
LH: loop header
LB: loop body
LE: loop exit
PB: predicated region body
PF: predicated region fallthrough
CT: control target
= control target key end

     0   :  { %6 = vsyncpa [#allocation3], 0  ;;  %s1232_s0 = inlined_call_operand.hbm [shape: f32[2,4,16,16], index: 0, kind: input, shape index: {}]   ;;  %s1233_s1 = inlined_call_operand.hbm [shape: f32[2,8,64], index: 1, kind: output, shape index: {}]  }
   0x1   :  { %8 = vsyncpa [#allocation3 + $0x1], 0 }
   0x2   :  { %9 = vsyncpa [#allocation4], 0 }
   0x3   :  { %11 = vsyncpa [#allocation4 + $0x1], 0  ;;  %s820_s6 = smov 0   ;;  %s822_s7 = smov 0  }
   0x4   :  { %s824_s8 = smov 0   ;;  %s826_s9 = smov 0  }
   0x5 LB: > { %s841_s10 = sadd.s32 4294967295, %s789_s9   ;;  %s620_s11 = sadd.s32 4294967294, %s789_s9   ;;  %s789_s9 = sphi %s826_s9, %s1248_s9   ;;  %s785_s8 = sphi %s824_s8, %s1247_s8   ;;  %s781_s7 = sphi %s822_s7, %s1246_s7   ;;  %s777_s6 = sphi %s820_s6, %s1245_s6  }
   0x6   : > { %s845_s12 = sadd.s32 1, %s789_s9   ;;  %s24_s13 = sadd.s32 1, %s785_s8 }
   0x7   : > { %s21_s14 = ssub.s32 %s789_s9, %s845_s12  ;;  %p31_p0 = scmp.ne.s32.totalorder %s785_s8, %s781_s7 }
   0x8   : > { %p22_p1 = scmp.eq.s32.totalorder %s21_s14, 0  ;;  %p32_p2 = scmp.eq.s32.totalorder %s789_s9, 0 }
   0x9   : > { %p37_p3 = scmp.ne.s32.totalorder %s781_s7, %s777_s6  ;;  %p38_p4 = scmp.eq.s32.totalorder %s841_s10, 0 }
   0xa   : > { %s857_s15 = scalar_select %p22_p1, %s785_s8, %s24_s13  }
   0xb   : > { %p859_p5 = por %p32_p2, %p31_p0  ;;  %p863_p6 = por %p38_p4, %p37_p3 }
   0xc   : > { %p61_p7 = scmp.eq.s32.totalorder %s841_s10, 1  ;;  %p67_p8 = scmp.eq.s32.totalorder %s620_s11, 1 }
   0xd   : > { %s1237_s17 = scalar_select %p863_p6, 1, 0 }
   0xe   : > { %p646_p10 = scmp.lt.s32.totalorder %s789_s9, 2  ;;  %p870_p11 = por %p61_p7, %p31_p0 }
   0xf   : > { %p874_p12 = por %p67_p8, %p37_p3  ;;  %s87_s20 = sand.u32 1, %s785_s8  }
  0x10   : > { %s1238_s18 = scalar_select %p870_p11, 1, 0 }
  0x11   : > { %s1239_s19 = scalar_select %p874_p12, 1, 0 }
  0x12   : > { %s633_s21 = sshll.u32 %s789_s9, 10  ;;  %s623_s22 = sshll.u32 %s87_s20, 6 }
  0x13   : > { %s883_s25 = scalar_lea.hbm %s1232_s0, %s633_s21  ;;  %s91_s26 = scalar_lea.vmem [#allocation2], %s623_s22 }
  0x14   : > { %s98_s27 = sshll.u32 %s91_s26, 4  ;;  %p887_p13 = pnand %p646_p10, %p859_p5  ;;  %s891_s27 = int_to_ptr.vmem [resolvable:$true] %s98_s27 }
  0x15   : > { %s893_s29 = scalar_lea.sflag [#allocation3], %s87_s20  ;;  %s697_s30 = scalar_lea.hbm %s883_s25, 1024 }
  0x16   : > { %p698_p0 = scmp.ne.s32.totalorder %s883_s25, %s697_s30  ;;  %p699_p1 = pneg %p887_p13 }
  0x17   : > { %s702_s4 = scalar_lea.hbm %s1232_s0, 2048  ;;  %p703_p4 = scmp.lt.s32.totalorder %s883_s25, %s1232_s0 }
  0x18   : > { %p700_p2 = pnand %p699_p1, %p698_p0  ;;  %p704_p5 = scmp.lt.s32.totalorder %s702_s4, %s697_s30 }
  0x1a   : > { %p701_p3 = pneg %p700_p2  ;;  %p705_p7 = por %p704_p5, %p703_p4 }
  0x1c   : > { %p706_p8 = pnand %p705_p7, %p701_p3 }
  0x1e   : > { %709 = shalt.err (!%p706_p8)
}
  0x1f   : > { %s710_s13 = scalar_lea.vmem %s891_s27, 1024  ;;  %s791_s14 = smov [#allocation2]  }
  0x20   : > { %p711_p10 = scmp.ne.s32.totalorder %s891_s27, %s710_s13  ;;  %s715_s16 = sshll.u32 %s791_s14, 4  ;;  %s716_s16 = int_to_ptr.vmem [resolvable:$false] %s715_s16 }
  0x21   : > { %s717_s20 = scalar_lea.vmem %s716_s16, 2048  ;;  %p718_p2 = scmp.lt.s32.totalorder %s891_s27, %s716_s16 }
  0x22   : > { %p713_p9 = pnand %p711_p10, %p699_p1  ;;  %p719_p12 = scmp.lt.s32.totalorder %s717_s20, %s710_s13 }
  0x24   : > { %p714_p0 = pneg %p713_p9  ;;  %p720_p11 = por %p719_p12, %p718_p2 }
  0x26   : > { %p721_p6 = pnand %p720_p11, %p714_p0 }
  0x28   : > { %724 = shalt.err (!%p721_p6)
}
  0x29   : > { %s792_s21 = smov 128   ;;  %s793_s22 = smov 8  }
  0x2a   : > { %641 = dma.hbm_to_vmem [thread:$0]  (!%p887_p13), %s883_s25, 1024, %s891_s27, %s893_s29, %s792_s21, %s792_s21, %s793_s22  }
  0x2b   : > { %p626_p9 = scmp.ge.s32.totalorder %s789_s9, 1  ;;  %p106_p1 = scmp.lt.s32.totalorder %s789_s9, 3 }
  0x2d   : > { %p107_p3 = pnand %p626_p9, %p106_p1 }
  0x2e   : > { %s917_s23 = sand.u32 (!%p107_p3), 1, %s781_s7   ;;  %p1241_p6 = scmp.ne.s32.totalorder (!%p107_p3), %s1237_s17, 0 }
  0x2f   : > { %110 = sbr.rel (%p107_p3) target bundleno = 402 (0x192), region = 24  ;;  %s627_s24 = sshll.u32 (!%p107_p3), %s917_s23, 6 }
  0x30   : > { %s113_s26 = scalar_lea.sflag (!%p107_p3), [#allocation3], %s917_s23  ;;  %s921_s30 = scalar_lea.vmem (!%p107_p3), [#allocation2], %s627_s24 }
  0x34   : > { %768 = dma.done.wait (%p1241_p6), %s113_s26, 1024  }
  0x35   : > { %770 = vsyncadd (%p1241_p6), %s113_s26, 4294966272  ;;  %vm147_vm0 = vcmask 1041409   ;;  %vm150_vm1 = vcmask 1042434   ;;  %vm153_vm2 = vcmask 1043459   ;;  %v234_v0 = vld [vmem:[%s921_s30 + $0x4] sm:$0x1] }
  0x36   : > { %v235_v1 = vld [vmem:[%s921_s30 + $0x14] sm:$0x1]  ;;  %v236_v2 = vld [vmem:[%s921_s30 + $0x24] sm:$0x1]  ;;  %v191_v6 = vld [vmem:[%s921_s30 + $0x2] sm:$0x1] }
  0x37   : > { %v237_v3 = vld [vmem:[%s921_s30 + $0x34] sm:$0x1]  ;;  %v242_v4 = vrot.slane %v235_v1, 7  ;;  %v244_v5 = vrot.slane %v236_v2, 6  ;;  %v192_v8 = vld [vmem:[%s921_s30 + $0x12] sm:$0x1] }
  0x38   : > { %v246_v7 = vrot.slane %v237_v3, 5  ;;  %v193_v9 = vld [vmem:[%s921_s30 + $0x22] sm:$0x1]  ;;  %v194_v11 = vld [vmem:[%s921_s30 + $0x32] sm:$0x1]  ;;  %v199_v12 = vrot.slane %v192_v8, 7 }
  0x39   : > { %v243_v10 = vsel %vm147_vm0, %v242_v4, %v234_v0  ;;  %v201_v13 = vrot.slane %v193_v9, 6  ;;  %v277_v14 = vld [vmem:[%s921_s30 + $0x6] sm:$0x1]  ;;  %v203_v16 = vrot.slane %v194_v11, 5  ;;  %v278_v17 = vld [vmem:[%s921_s30 + $0x16] sm:$0x1] }
  0x3a   : > { %v245_v15 = vsel %vm150_vm1, %v244_v5, %v243_v10  ;;  %v279_v18 = vld [vmem:[%s921_s30 + $0x26] sm:$0x1]  ;;  %v200_v20 = vsel %vm147_vm0, %v199_v12, %v191_v6  ;;  %v280_v21 = vld [vmem:[%s921_s30 + $0x36] sm:$0x1]  ;;  %v285_v22 = vrot.slane %v278_v17, 7  ;;  %s794_s17 = smov 127  }
  0x3b   : > { %v941_v19 = vsel %vm153_vm2, %v246_v7, %v245_v15  ;;  %v287_v23 = vrot.slane %v279_v18, 6  ;;  %v202_v24 = vsel %vm150_vm1, %v201_v13, %v200_v20  ;;  %v321_v25 = vld [vmem:[%s921_s30 + $0x18] sm:$0x1]  ;;  %v289_v28 = vrot.slane %v280_v21, 5  ;;  %v322_v30 = vld [vmem:[%s921_s30 + $0x28] sm:$0x1] }
  0x3c   : > { %249 = vrot.lane.b32.xlu1 %v941_v19, %s794_s17  ;;  %v950_v26 = vsel %vm153_vm2, %v203_v16, %v202_v24  ;;  %v286_v27 = vsel %vm147_vm0, %v285_v22, %v277_v14  ;;  %v328_v31 = vrot.slane %v321_v25, 7  ;;  %s795_s25 = smov 125   ;;  %v320_v32 = vld [vmem:[%s921_s30 + $0x8] sm:$0x1]  ;;  %s796_s27 = smov 126   ;;  %v330_v35 = vrot.slane %v322_v30, 6 }
  0x3d   : > { %206 = vrot.lane.b32.xlu0 %v950_v26, %s794_s17  ;;  %v288_v29 = vsel %vm150_vm1, %v287_v23, %v286_v27  ;;  %v323_v34 = vld [vmem:[%s921_s30 + $0x38] sm:$0x1]  ;;  %v139_v39 = vld [vmem:[%s921_s30 + $0x10] sm:$0x1]  ;;  %v140_v40 = vld [vmem:[%s921_s30 + $0x20] sm:$0x1] }
  0x3e   : > { %v961_v33 = vsel %vm153_vm2, %v289_v28, %v288_v29  ;;  %v329_v36 = vsel %vm147_vm0, %v328_v31, %v320_v32  ;;  %v332_v37 = vrot.slane %v323_v34, 5  ;;  %v146_v41 = vrot.slane %v139_v39, 7  ;;  %v138_v43 = vld [vmem:[%s921_s30] sm:$0x1]  ;;  %v141_v44 = vld [vmem:[%s921_s30 + $0x30] sm:$0x1] }
  0x3f   : > { %v331_v38 = vsel %vm150_vm1, %v330_v35, %v329_v36  ;;  %v149_v45 = vrot.slane %v140_v40, 6  ;;  %s797_s28 = smov 124   ;;  %v364_v46 = vld [vmem:[%s921_s30 + $0x1a] sm:$0x1]  ;;  %v152_v48 = vrot.slane %v141_v44, 5  ;;  %s798_s29 = smov 123  }
  0x40   : > { %212 = vrot.lane.b32.xlu1 %v950_v26, %s795_s25  ;;  %v977_v42 = vsel %vm153_vm2, %v332_v37, %v331_v38  ;;  %v148_v47 = vsel %vm147_vm0, %v146_v41, %v138_v43  ;;  %v365_v51 = vld [vmem:[%s921_s30 + $0x2a] sm:$0x1]  ;;  %v371_v52 = vrot.slane %v364_v46, 7  ;;  %v366_v54 = vld [vmem:[%s921_s30 + $0x3a] sm:$0x1]  ;;  %s799_s2 = smov 122  }
  0x41   : > { %209 = vrot.lane.b32.xlu0 %v950_v26, %s796_s27  ;;  %v151_v49 = vsel %vm150_vm1, %v149_v45, %v148_v47  ;;  %v363_v53 = vld [vmem:[%s921_s30 + $0xa] sm:$0x1]  ;;  %v373_v55 = vrot.slane %v365_v51, 6  ;;  %v375_v57 = vrot.slane %v366_v54, 5  ;;  %v407_v59 = vld [vmem:[%s921_s30 + $0x1c] sm:$0x1] }
  0x42   : > { %v989_v50 = vsel %vm153_vm2, %v152_v48, %v151_v49  ;;  %v372_v56 = vsel %vm147_vm0, %v371_v52, %v363_v53  ;;  %v408_v61 = vld [vmem:[%s921_s30 + $0x2c] sm:$0x1]  ;;  %v414_v62 = vrot.slane %v407_v59, 7  ;;  %v409_v0 = vld [vmem:[%s921_s30 + $0x3c] sm:$0x1]  ;;  %s800_s3 = smov 121  }
  0x43   : > { %v374_v58 = vsel %vm150_vm1, %v373_v55, %v372_v56  ;;  %v406_v63 = vld [vmem:[%s921_s30 + $0xc] sm:$0x1]  ;;  %v416_v1 = vrot.slane %v408_v61, 6  ;;  %v418_v3 = vrot.slane %v409_v0, 5  ;;  %v450_v5 = vld [vmem:[%s921_s30 + $0x1e] sm:$0x1] }
  0x44   : > { %292 = vrot.lane.b32.xlu1 %v961_v33, %s794_s17  ;;  %v1008_v60 = vsel %vm153_vm2, %v375_v57, %v374_v58  ;;  %v415_v2 = vsel %vm147_vm0, %v414_v62, %v406_v63  ;;  %v451_v7 = vld [vmem:[%s921_s30 + $0x2e] sm:$0x1]  ;;  %v457_v8 = vrot.slane %v450_v5, 7  ;;  %v452_v10 = vld [vmem:[%s921_s30 + $0x3e] sm:$0x1]  ;;  %vm177_vm3 = vcmask 7168  }
  0x45   : > { %252 = vrot.lane.b32.xlu0 %v941_v19, %s796_s27  ;;  %v417_v4 = vsel %vm150_vm1, %v416_v1, %v415_v2  ;;  %v449_v9 = vld [vmem:[%s921_s30 + $0xe] sm:$0x1]  ;;  %v459_v11 = vrot.slane %v451_v7, 6  ;;  %v461_v13 = vrot.slane %v452_v10, 5  ;;  %vm179_vm4 = vcmask 15360   ;;  %s801_s4 = smov 8  }
  0x46   : > { %v1029_v6 = vsel %vm153_vm2, %v418_v3, %v417_v4  ;;  %v458_v12 = vsel %vm147_vm0, %v457_v8, %v449_v9  ;;  %vm181_vm5 = vcmask 23552   ;;  %vm183_vm6 = vcmask 31744   ;;  %s802_s5 = smov 16   ;;  %s803_s11 = smov 24  }
  0x47   : > { %v460_v14 = vsel %vm150_vm1, %v459_v11, %v458_v12  ;;  %vm185_vm7 = vcmask 39936   ;;  %vm187_vm8 = vcmask 48128   ;;  %vm189_vm9 = vcmask 56320   ;;  %s804_s13 = smov 32   ;;  %s628_s14 = sshll.u32 %s917_s23, 3 }
  0x48   : > { %255 = vrot.lane.b32.xlu1 %v941_v19, %s795_s25  ;;  %v1047_v15 = vsel %vm153_vm2, %v461_v13, %v460_v14  ;;  %s805_s16 = smov 40   ;;  %vm135_vm10 = vcmask 517120   ;;  %s1159_s20 = scalar_lea.vmem [#allocation5], %s628_s14  ;;  %vm520_vm11 = vcmask 64512   ;;  %vm522_vm12 = vcmask 130048  }
  0x49   : > { %215 = vrot.lane.b32.xlu0 %v950_v26, %s797_s28  ;;  %s807_s21 = smov 48   ;;  %s808_s22 = smov 56   ;;  %vm524_vm13 = vcmask 195584   ;;  %vm526_vm14 = vcmask 261120   ;;  %vm528_vm15 = vcmask 326656   ;;  %vm530_vm0 = vcmask 392192  }
  0x4a   : > { %s630_s24 = sshll.u32 %s841_s10, 7  ;;  %s550_s26 = sshll.u32 %s1159_s20, 4  ;;  %vm532_vm1 = vcmask 457728   ;;  %vm534_vm2 = vcmask 519168   ;;  %s551_s26 = int_to_ptr.vmem [resolvable:$true] %s550_s26 }
  0x4b   : > { %p1242_p12 = scmp.ne.s32.totalorder %s1238_s18, 0  ;;  %s809_s10 = smov [#allocation5]  }
  0x4c   : > { %335 = vrot.lane.b32.xlu1 %v977_v42, %s794_s17 }
  0x4d   : > { %295 = vrot.lane.b32.xlu0 %v961_v33, %s796_s27 }
  0x50   : > { %258 = vrot.lane.b32.xlu1 %v941_v19, %s797_s28 }
  0x51   : > { %218 = vrot.lane.b32.xlu0 %v950_v26, %s798_s29 }
  0x54   : > { %338 = vrot.lane.b32.xlu1 %v977_v42, %s796_s27 }
  0x55   : > { %298 = vrot.lane.b32.xlu0 %v961_v33, %s795_s25 }
  0x58   : > { %221 = vrot.lane.b32.xlu1 %v950_v26, %s799_s2 }
  0x59   : > { %378 = vrot.lane.b32.xlu0 %v1008_v60, %s794_s17 }
  0x5c   : > { %301 = vrot.lane.b32.xlu1 %v961_v33, %s797_s28 }
  0x5d   : > { %261 = vrot.lane.b32.xlu0 %v941_v19, %s798_s29 }
  0x60   : > { %381 = vrot.lane.b32.xlu1 %v1008_v60, %s796_s27 }
  0x61   : > { %341 = vrot.lane.b32.xlu0 %v977_v42, %s795_s25 }
  0x64   : > { %224 = vrot.lane.b32.xlu1 %v950_v26, %s800_s3 }
  0x65   : > { %421 = vrot.lane.b32.xlu0 %v1029_v6, %s794_s17 }
  0x68   : > { %304 = vrot.lane.b32.xlu1 %v961_v33, %s798_s29 }
  0x69   : > { %264 = vrot.lane.b32.xlu0 %v941_v19, %s799_s2 }
  0x6c   : > { %384 = vrot.lane.b32.xlu1 %v1008_v60, %s795_s25 }
  0x6d   : > { %344 = vrot.lane.b32.xlu0 %v977_v42, %s797_s28 }
  0x70   : > { %464 = vrot.lane.b32.xlu1 %v1047_v15, %s794_s17 }
  0x71   : > { %424 = vrot.lane.b32.xlu0 %v1029_v6, %s796_s27 }
  0x74   : > { %307 = vrot.lane.b32.xlu1 %v961_v33, %s799_s2 }
  0x75   : > { %267 = vrot.lane.b32.xlu0 %v941_v19, %s800_s3 }
  0x78   : > { %387 = vrot.lane.b32.xlu1 %v1008_v60, %s797_s28 }
  0x79   : > { %347 = vrot.lane.b32.xlu0 %v977_v42, %s798_s29 }
  0x7c   : > { %467 = vrot.lane.b32.xlu1 %v1047_v15, %s796_s27 }
  0x7d   : > { %427 = vrot.lane.b32.xlu0 %v1029_v6, %s795_s25 }
  0x80   : > { %350 = vrot.lane.b32.xlu1 %v977_v42, %s799_s2 }
  0x81   : > { %310 = vrot.lane.b32.xlu0 %v961_v33, %s800_s3 }
  0x84   : > { %430 = vrot.lane.b32.xlu1 %v1029_v6, %s797_s28 }
  0x85   : > { %390 = vrot.lane.b32.xlu0 %v1008_v60, %s798_s29 }
  0x88   : > { %353 = vrot.lane.b32.xlu1 %v977_v42, %s800_s3 }
  0x89   : > { %470 = vrot.lane.b32.xlu0 %v1047_v15, %s795_s25 }
  0x8c   : > { %433 = vrot.lane.b32.xlu1 %v1029_v6, %s798_s29 }
  0x8d   : > { %393 = vrot.lane.b32.xlu0 %v1008_v60, %s799_s2 }
  0x90   : > { %396 = vrot.lane.b32.xlu1 %v1008_v60, %s800_s3 }
  0x91   : > { %473 = vrot.lane.b32.xlu0 %v1047_v15, %s797_s28 }
  0x94   : > { %476 = vrot.lane.b32.xlu1 %v1047_v15, %s798_s29 }
  0x95   : > { %436 = vrot.lane.b32.xlu0 %v1029_v6, %s799_s2 }
  0x98   : > { %479 = vrot.lane.b32.xlu1 %v1047_v15, %s799_s2 }
  0x99   : > { %439 = vrot.lane.b32.xlu0 %v1029_v6, %s800_s3 }
  0x9c   : > { %156 = vrot.lane.b32.xlu1 %v989_v50, %s794_s17 }
  0x9d   : > { %482 = vrot.lane.b32.xlu0 %v1047_v15, %s800_s3 }
  0xa0   : > { %162 = vrot.lane.b32.xlu1 %v989_v50, %s795_s25  ;;  %s1194_s25 = scalar_lea.hbm %s1233_s1, %s630_s24 }
  0xa1   : > { %159 = vrot.lane.b32.xlu0 %v989_v50, %s796_s27  ;;  %s537_s27 = scalar_lea.sflag [#allocation4], %s917_s23 }
  0xa4   : > { %168 = vrot.lane.b32.xlu1 %v989_v50, %s798_s29  ;;  %s729_s29 = sshll.u32 %s809_s10, 4  ;;  %s730_s29 = int_to_ptr.vmem [resolvable:$false] %s729_s29 }
  0xa5   : > { %165 = vrot.lane.b32.xlu0 %v989_v50, %s797_s28  ;;  %s725_s28 = scalar_lea.vmem %s551_s26, 128  ;;  %p732_p5 = scmp.lt.s32.totalorder %s551_s26, %s730_s29 }
  0xa6   : > { %p726_p11 = scmp.ne.s32.totalorder %s551_s26, %s725_s28 }
  0xa8   : > { %174 = vrot.lane.b32.xlu1 %v989_v50, %s800_s3  ;;  %p727_p13 = pnand %p726_p11, %p1242_p12 }
  0xa9   : > { %171 = vrot.lane.b32.xlu0 %v989_v50, %s799_s2  ;;  %s731_s2 = scalar_lea.vmem %s730_s29, 256 }
  0xaa   : > { %p728_p4 = pneg %p727_p13  ;;  %p733_p7 = scmp.lt.s32.totalorder %s731_s2, %s725_s28 }
  0xac   : > { %p734_p8 = por %p733_p7, %p732_p5 }
  0xae   : > { %v250_v16 = vpop.permute.xlu1 %249  ;;  %p735_p10 = pnand %p734_p8, %p728_p4 }
  0xaf   : > { %v207_v17 = vpop.permute.xlu0 %206  ;;  %v270_v54 = vsel %vm177_vm3, %v941_v19, %v250_v16 }
  0xb0   : > { %v227_v36 = vsel %vm177_vm3, %v950_v26, %v207_v17 }
  0xb2   : > { %v213_v18 = vpop.permute.xlu1 %212 }
  0xb3   : > { %v210_v20 = vpop.permute.xlu0 %209 }
  0xb4   : > { %v228_v37 = vsel %vm179_vm4, %v227_v36, %v210_v20 }
  0xb5   : > { %v229_v40 = vsel %vm181_vm5, %v228_v37, %v213_v18 }
  0xb6   : > { %v293_v21 = vpop.permute.xlu1 %292 }
  0xb7   : > { %v253_v22 = vpop.permute.xlu0 %252  ;;  %v313_v3 = vsel %vm177_vm3, %v961_v33, %v293_v21 }
  0xb8   : > { %v271_v55 = vsel %vm179_vm4, %v270_v54, %v253_v22 }
  0xba   : > { %v256_v23 = vpop.permute.xlu1 %255 }
  0xbb   : > { %v216_v24 = vpop.permute.xlu0 %215  ;;  %v272_v57 = vsel %vm181_vm5, %v271_v55, %v256_v23 }
  0xbc   : > { %v230_v41 = vsel %vm183_vm6, %v229_v40, %v216_v24 }
  0xbe   : > { %v336_v25 = vpop.permute.xlu1 %335 }
  0xbf   : > { %v296_v27 = vpop.permute.xlu0 %295  ;;  %v356_v13 = vsel %vm177_vm3, %v977_v42, %v336_v25 }
  0xc0   : > { %v314_v4 = vsel %vm179_vm4, %v313_v3, %v296_v27 }
  0xc2   : > { %v259_v28 = vpop.permute.xlu1 %258 }
  0xc3   : > { %v219_v29 = vpop.permute.xlu0 %218  ;;  %v273_v58 = vsel %vm183_vm6, %v272_v57, %v259_v28 }
  0xc4   : > { %v231_v44 = vsel %vm185_vm7, %v230_v41, %v219_v29 }
  0xc6   : > { %v339_v30 = vpop.permute.xlu1 %338 }
  0xc7   : > { %v299_v31 = vpop.permute.xlu0 %298  ;;  %v357_v33 = vsel %vm179_vm4, %v356_v13, %v339_v30 }
  0xc8   : > { %v315_v7 = vsel %vm181_vm5, %v314_v4, %v299_v31 }
  0xca   : > { %v222_v32 = vpop.permute.xlu1 %221 }
  0xcb   : > { %v1111_v34 = vpop.permute.xlu0 %378  ;;  %v232_v45 = vsel %vm187_vm8, %v231_v44, %v222_v32 }
  0xcc   : > { %v399_v25 = vsel %vm177_vm3, %v1008_v60, %v1111_v34  ;;  %v806_v60 = vmov 0.0  }
  0xcd   : > { %136 = vst.msk [vmem:[%s1159_s20] sm:$0x3] %vm135_vm10, %v806_v60  ;;  %137 = vst.msk [vmem:[%s1159_s20 + $0x6] sm:$0x3] %vm135_vm10, %v806_v60 }
  0xce   : > { %v302_v35 = vpop.permute.xlu1 %301 }
  0xcf   : > { %v262_v38 = vpop.permute.xlu0 %261  ;;  %v316_v8 = vsel %vm183_vm6, %v315_v7, %v302_v35 }
  0xd0   : > { %v274_v61 = vsel %vm185_vm7, %v273_v58, %v262_v38 }
  0xd2   : > { %v382_v39 = vpop.permute.xlu1 %381 }
  0xd3   : > { %v342_v43 = vpop.permute.xlu0 %341  ;;  %v400_v27 = vsel %vm179_vm4, %v399_v25, %v382_v39 }
  0xd4   : > { %v358_v17 = vsel %vm181_vm5, %v357_v33, %v342_v43 }
  0xd6   : > { %v225_v46 = vpop.permute.xlu1 %224 }
  0xd7   : > { %v233_v26 = vsel %vm189_vm9, %v232_v45, %v225_v46  ;;  %v1121_v47 = vpop.permute.xlu0 %421 }
  0xd8   : > { %493 = vrot.lane.b32.xlu0 %v233_v26, %s801_s4  ;;  %v442_v34 = vsel %vm177_vm3, %v1029_v6, %v1121_v47 }
  0xda   : > { %v305_v48 = vpop.permute.xlu1 %304 }
  0xdb   : > { %v265_v49 = vpop.permute.xlu0 %264  ;;  %v317_v10 = vsel %vm185_vm7, %v316_v8, %v305_v48 }
  0xdc   : > { %v275_v62 = vsel %vm187_vm8, %v274_v61, %v265_v49 }
  0xde   : > { %v385_v51 = vpop.permute.xlu1 %384 }
  0xdf   : > { %v345_v52 = vpop.permute.xlu0 %344  ;;  %v401_v29 = vsel %vm181_vm5, %v400_v27, %v385_v51 }
  0xe0   : > { %v359_v18 = vsel %vm183_vm6, %v358_v17, %v345_v52 }
  0xe2   : > { %v1123_v53 = vpop.permute.xlu1 %464 }
  0xe3   : > { %v425_v56 = vpop.permute.xlu0 %424  ;;  %v485_v45 = vsel %vm177_vm3, %v1047_v15, %v1123_v53 }
  0xe4   : > { %v443_v40 = vsel %vm179_vm4, %v442_v34, %v425_v56 }
  0xe6   : > { %v308_v59 = vpop.permute.xlu1 %307 }
  0xe7   : > { %v268_v63 = vpop.permute.xlu0 %267  ;;  %v318_v11 = vsel %vm187_vm8, %v317_v10, %v308_v59 }
  0xe8   : > { %v276_v0 = vsel %vm189_vm9, %v275_v62, %v268_v63 }
  0xe9   : > { %497 = vrot.lane.b32.xlu1 %v276_v0, %s802_s5 }
  0xea   : > { %v388_v1 = vpop.permute.xlu1 %387 }
  0xeb   : > { %v348_v2 = vpop.permute.xlu0 %347  ;;  %v402_v30 = vsel %vm183_vm6, %v401_v29, %v388_v1 }
  0xec   : > { %v360_v21 = vsel %vm185_vm7, %v359_v18, %v348_v2 }
  0xee   : > { %v468_v19 = vpop.permute.xlu1 %467 }
  0xef   : > { %v428_v5 = vpop.permute.xlu0 %427  ;;  %v486_v26 = vsel %vm179_vm4, %v485_v45, %v468_v19 }
  0xf0   : > { %v444_v43 = vsel %vm181_vm5, %v443_v40, %v428_v5 }
  0xf2   : > { %v351_v9 = vpop.permute.xlu1 %350 }
  0xf3   : > { %v311_v12 = vpop.permute.xlu0 %310  ;;  %v361_v22 = vsel %vm187_vm8, %v360_v21, %v351_v9 }
  0xf4   : > { %v319_v14 = vsel %vm189_vm9, %v318_v11, %v311_v12 }
  0xf5   : > { %501 = vrot.lane.b32.xlu0 %v319_v14, %s803_s11 }
  0xf6   : > { %v431_v16 = vpop.permute.xlu1 %430 }
  0xf7   : > { %v391_v20 = vpop.permute.xlu0 %390  ;;  %v445_v44 = vsel %vm183_vm6, %v444_v43, %v431_v16 }
  0xf8   : > { %v403_v32 = vsel %vm185_vm7, %v402_v30, %v391_v20 }
  0xfa   : > { %v354_v23 = vpop.permute.xlu1 %353 }
  0xfb   : > { %v362_v42 = vsel %vm189_vm9, %v361_v22, %v354_v23  ;;  %v471_v24 = vpop.permute.xlu0 %470 }
  0xfc   : > { %505 = vrot.lane.b32.xlu1 %v362_v42, %s804_s13  ;;  %v487_v6 = vsel %vm181_vm5, %v486_v26, %v471_v24 }
  0xfe   : > { %v434_v28 = vpop.permute.xlu1 %433 }
  0xff   : > { %v394_v31 = vpop.permute.xlu0 %393  ;;  %v446_v46 = vsel %vm185_vm7, %v445_v44, %v434_v28 }
 0x100   : > { %v404_v35 = vsel %vm187_vm8, %v403_v32, %v394_v31 }
 0x102   : > { %v397_v36 = vpop.permute.xlu1 %396 }
 0x103   : > { %v405_v37 = vsel %vm189_vm9, %v404_v35, %v397_v36  ;;  %v474_v38 = vpop.permute.xlu0 %473 }
 0x104   : > { %509 = vrot.lane.b32.xlu0 %v405_v37, %s805_s16  ;;  %v488_v52 = vsel %vm183_vm6, %v487_v6, %v474_v38 }
 0x106   : > { %v477_v39 = vpop.permute.xlu1 %476 }
 0x107   : > { %v437_v41 = vpop.permute.xlu0 %436  ;;  %v489_v54 = vsel %vm185_vm7, %v488_v52, %v477_v39 }
 0x108   : > { %v447_v48 = vsel %vm187_vm8, %v446_v46, %v437_v41 }
 0x10a   : > { %v480_v47 = vpop.permute.xlu1 %479 }
 0x10b   : > { %v440_v49 = vpop.permute.xlu0 %439  ;;  %v490_v15 = vsel %vm187_vm8, %v489_v54, %v480_v47 }
 0x10c   : > { %v448_v51 = vsel %vm189_vm9, %v447_v48, %v440_v49 }
 0x10d   : > { %513 = vrot.lane.b32.xlu1 %v448_v51, %s807_s21 }
 0x10e   : > { %v157_v56 = vpop.permute.xlu1 %156 }
 0x10f   : > { %v483_v53 = vpop.permute.xlu0 %482  ;;  %v178_v59 = vsel %vm177_vm3, %v989_v50, %v157_v56 }
 0x110   : > { %v491_v55 = vsel %vm189_vm9, %v490_v15, %v483_v53 }
 0x111   : > { %517 = vrot.lane.b32.xlu0 %v491_v55, %s808_s22 }
 0x112   : > { %v163_v58 = vpop.permute.xlu1 %162 }
 0x113   : > { %v160_v57 = vpop.permute.xlu0 %159 }
 0x114   : > { %v180_v62 = vsel %vm179_vm4, %v178_v59, %v160_v57 }
 0x115   : > { %v182_v0 = vsel %vm181_vm5, %v180_v62, %v163_v58 }
 0x116   : > { %v169_v63 = vpop.permute.xlu1 %168 }
 0x117   : > { %v166_v61 = vpop.permute.xlu0 %165 }
 0x118   : > { %v184_v2 = vsel %vm183_vm6, %v182_v0, %v166_v61 }
 0x119   : > { %v186_v3 = vsel %vm185_vm7, %v184_v2, %v169_v63 }
 0x11a   : > { %v175_v19 = vpop.permute.xlu1 %174 }
 0x11b   : > { %v172_v1 = vpop.permute.xlu0 %171 }
 0x11c   : > { %v188_v5 = vsel %vm187_vm8, %v186_v3, %v172_v1 }
 0x11d   : > { %v190_v50 = vsel %vm189_vm9, %v188_v5, %v175_v19 }
 0x14a   : > { %v494_v4 = vpop.permute.xlu0 %493 }
 0x14b   : > { %v521_v10 = vsel %vm520_vm11, %v190_v50, %v494_v4 }
 0x15b   : > { %v498_v7 = vpop.permute.xlu1 %497 }
 0x15c   : > { %v523_v11 = vsel %vm522_vm12, %v521_v10, %v498_v7 }
 0x167   : > { %v502_v8 = vpop.permute.xlu0 %501 }
 0x168   : > { %v525_v13 = vsel %vm524_vm13, %v523_v11, %v502_v8 }
 0x16e   : > { %v506_v9 = vpop.permute.xlu1 %505 }
 0x16f   : > { %v527_v33 = vsel %vm526_vm14, %v525_v13, %v506_v9 }
 0x176   : > { %v510_v12 = vpop.permute.xlu0 %509 }
 0x177   : > { %v529_v16 = vsel %vm528_vm15, %v527_v33, %v510_v12 }
 0x17f   : > { %v514_v14 = vpop.permute.xlu1 %513 }
 0x180   : > { %v531_v17 = vsel %vm530_vm0, %v529_v16, %v514_v14 }
 0x183   : > { %v518_v18 = vpop.permute.xlu0 %517 }
 0x184   : > { %v533_v20 = vsel %vm532_vm1, %v531_v17, %v518_v18 }
 0x185   : > { %535 = vst.msk [vmem:[%s1159_s20 + $0x2] sm:$0xf] %vm534_vm2, %v533_v20 }
 0x186   : > { %738 = shalt.err (!%p735_p10)
}
 0x187   : > { %s739_s3 = scalar_lea.hbm %s1194_s25, 128  ;;  %s743_s5 = scalar_lea.hbm %s1233_s1, 256 }
 0x188   : > { %p740_p0 = scmp.ne.s32.totalorder %s1194_s25, %s739_s3  ;;  %p744_p1 = scmp.lt.s32.totalorder %s1194_s25, %s1233_s1 }
 0x189   : > { %p745_p3 = scmp.lt.s32.totalorder %s743_s5, %s739_s3 }
 0x18a   : > { %p741_p2 = pnand %p740_p0, %p1242_p12 }
 0x18b   : > { %p746_p6 = por %p745_p3, %p744_p1 }
 0x18c   : > { %p742_p9 = pneg %p741_p2 }
 0x18e   : > { %p747_p11 = pnand %p746_p6, %p742_p9 }
 0x190   : > { %750 = shalt.err (!%p747_p11)
}
 0x191   : > { %636 = dma.vmem_to_hbm [thread:$0]  (%p1242_p12), %s551_s26, 128, %s1194_s25, %s537_s27  }
 0x192 PF: > { %s562_s14 = sand.u32 1, %s777_s6   ;;  %p1243_p13 = scmp.ne.s32.totalorder %s1239_s19, 0 }
 0x193   : > { %p1244_p4 = scmp.ge.s32.totalorder %s789_s9, 2  ;;  %s563_s16 = scalar_lea.sflag [#allocation4], %s562_s14 }
 0x195   : > { %p643_p5 = pnand %p1244_p4, %p1243_p13 }
 0x197   : > { %p644_p7 = pneg %p643_p5 }
 0x199   : > { %772 = dma.done.wait (%p644_p7), %s563_s16, 128  }
 0x19a   : > { %774 = vsyncadd (%p644_p7), %s563_s16, 4294967168  ;;  %p14_p8 = scmp.ge.s32.totalorder %s845_s12, 4   ;;  %s1245_s6 = smov %s781_s7 }
 0x19b   : > { %s1246_s7 = smov %s785_s8  ;;  %s1247_s8 = smov %s857_s15 }
 0x19c   : > { %s1248_s9 = smov %s845_s12  ;;  %16 = sbr.rel (!%p14_p8) target bundleno = 5 (0x5), region = 69 }
 0x1a1   :  { %568 = vsyncpa [#allocation3], 1 }
 0x1a2   :  { %570 = vsyncpa [#allocation3 + $0x1], 1 }
 0x1a3   :  { %571 = vsyncpa [#allocation4], 1 }
 0x1a4   :  { %573 = vsyncpa [#allocation4 + $0x1], 1 }

</bundles_post_ra>
